<compile_context>
chip_gen: v6e
topology: v6e:2x2x1
jax: 0.10.0
libtpu: 0.0.40
codegen_flags: <defaults>
</compile_context>

<pallas_src>
import functools

import jax
import jax.numpy as jnp
from jax.experimental import pallas as pl
from jax.experimental.pallas import tpu as pltpu

_LANE = 128
_SUB = 8


def _round_up(n, m):
    return ((n + m - 1) // m) * m


def _fused_mlp_kernel(x_ref, p_ref, o_ref, *, layers, output_bound):
    """Fused MLP forward, all tensors resident in VMEM.

    x_ref : [B, D_in]            activations (features on the lane axis)
    p_ref : [R, L] packed params (every layer's weight & bias slab, zero padded)
    o_ref : [B, N_pad]           lane-dense (multiple-of-128) output block
    layers: static tuple of (w_row_off, k_rows, b_row_off, n_cols) per layer
    """
    h = x_ref[...]
    last = len(layers) - 1
    for i, (w_off, k, b_off, n) in enumerate(layers):
        w = p_ref[w_off:w_off + k, :n]      # static slice of the packed buffer
        b = p_ref[b_off:b_off + 1, :n]      # [1, n] -> broadcasts over batch
        y = jnp.dot(h, w, preferred_element_type=jnp.float32) + b
        if i < last:
            h = jnp.maximum(y, 0.0)         # ReLU (VPU)
        else:
            h = jnp.tanh(y)                 # tanh head (EUP)
            if output_bound != 1.0:         # trace-time constant: skip the vmul at 1.0
                h = h * output_bound
    o_ref[...] = h.astype(o_ref.dtype)


def pack_params(params):
    """Pack per-layer (W [D_in, D_out], b [D_out]) into ONE contiguous f32 buffer.

    Each weight slab's row count (contraction dim) is padded to match the
    padded lane width of the previous layer's activations, and its columns are
    lane-padded to a multiple of 128.  Each bias occupies one sublane-padded
    (8-row) slab.  The zero padding is mathematically inert (zero weight rows
    meet zero activation lanes; zero columns produce zero activation lanes),
    so the kernel never has to slice activations.  Runs once at init.
    """
    lane_w = max(_round_up(w.shape[1], _LANE) for w, _ in params)
    slabs, meta = [], []
    row = 0
    k_real_first = params[0][0].shape[0]          # real input feature count
    k_pad = _round_up(k_real_first, _SUB)         # slab rows for the first layer
    k_slice = k_real_first                        # rows the kernel actually reads
    for w, b in params:
        d_in, d_out = w.shape
        n_pad = _round_up(d_out, _LANE)
        w_slab = jnp.zeros((k_pad, lane_w), jnp.float32)
        w_slab = w_slab.at[:d_in, :d_out].set(jnp.asarray(w, jnp.float32))
        b_slab = jnp.zeros((_SUB, lane_w), jnp.float32)
        b_slab = b_slab.at[0, :d_out].set(jnp.asarray(b, jnp.float32).reshape(-1))
        w_off = row
        row += k_pad
        b_off = row
        row += _SUB
        slabs += [w_slab, b_slab]
        meta.append((w_off, k_slice, b_off, n_pad))
        # the next layer contracts over this layer's padded activation width
        k_pad = n_pad
        k_slice = n_pad
    packed = jnp.concatenate(slabs, axis=0)
    info = dict(layers=tuple(meta), out_pad=meta[-1][3],
                out_dim=params[-1][0].shape[1], in_dim=params[0][0].shape[0])
    return packed, info


def deterministic_continuous_policy_forward(x, packed, info, output_bound=1.0,
                                            *, batch_tile=256):
    """Fused policy-MLP forward.

    NOTE: output_bound must be a static Python float — it is baked into the
    kernel at trace time (a traced scalar would force per-value recompiles).
    """
    B = x.shape[0]
    layers = info["layers"]
    out_pad = info["out_pad"]
    out_dim = info["out_dim"]
    total_rows, lane_w = packed.shape

    kernel = functools.partial(_fused_mlp_kernel, layers=layers,
                               output_bound=float(output_bound))
    out_shape = jax.ShapeDtypeStruct((B, out_pad), jnp.float32)

    # VMEM-budget guard (matters first on v7x's 64 MiB / 32 MiB scoped default).
    working_bytes = 4 * (packed.size + x.size + 3 * B * max(lane_w, out_pad))
    ck = {}
    if working_bytes > (16 << 20):
        ck["vmem_limit_bytes"] = int(min(3 * working_bytes, 100 << 20))

    if B >= 2 * batch_tile and B % batch_tile == 0:
        # Large-batch path: parallel grid over batch tiles (uses both v7x TCs);
        # params use the same block every step and stay resident in VMEM.
        ck["dimension_semantics"] = ("parallel",)
        out = pl.pallas_call(
            kernel,
            out_shape=out_shape,
            grid=(B // batch_tile,),
            in_specs=[
                pl.BlockSpec((batch_tile, x.shape[1]), lambda i: (i, 0)),
                pl.BlockSpec((total_rows, lane_w), lambda i: (0, 0)),
            ],
            out_specs=pl.BlockSpec((batch_tile, out_pad), lambda i: (i, 0)),
            compiler_params=pltpu.CompilerParams(**ck),
        )(x, packed)
        return out[:, :out_dim]

    # Small-batch path: grid-less single launch, exactly two input DMAs
    # (x + packed params); no wrapper-side batch padding.
    vmem = pl.BlockSpec(memory_space=pltpu.MemorySpace.VMEM)
    call_kwargs = {}
    if ck:
        call_kwargs["compiler_params"] = pltpu.CompilerParams(**ck)
    out = pl.pallas_call(
        kernel,
        out_shape=out_shape,
        in_specs=[vmem, vmem],
        out_specs=vmem,
        **call_kwargs,
    )(x, packed)
    return out[:, :out_dim]


def init_params(key, input_size, layers_dim, output_size):
    """Mimics PyTorch nn.Linear default init:
    U(-1/sqrt(fan_in), 1/sqrt(fan_in)) for both weight and bias.
    Weights stored as [D_in, D_out] (transpose of torch's [out, in])."""
    params = []
    dims = [input_size] + list(layers_dim) + [output_size]
    for i in range(len(dims) - 1):
        fan_in, fan_out = dims[i], dims[i + 1]
        key, kw, kb = jax.random.split(key, 3)
        bound = 1.0 / jnp.sqrt(fan_in)
        w = jax.random.uniform(kw, (fan_in, fan_out), jnp.float32, -bound, bound)
        b = jax.random.uniform(kb, (fan_out,), jnp.float32, -bound, bound)
        params.append((w, b))
    return params


if __name__ == "__main__":
    # Small shapes consistent with the module's forward:
    #   input_size=16, layers_dim=[32, 32], output_size=8, batch=2
    batch = 2
    input_size = 16
    layers_dim = [32, 32]
    output_size = 8

    key = jax.random.PRNGKey(0)
    key, kx = jax.random.split(key)
    x = jax.random.normal(kx, (batch, input_size), jnp.float32)

    params = init_params(key, input_size, layers_dim, output_size)
    packed, info = pack_params(params)

    def ref_forward(x, params, bound):
        h = x
        for w, b in params[:-1]:
            h = jax.nn.relu(h @ w + b.reshape(1, -1))
        w_a, b_a = params[-1]
        return jnp.tanh(h @ w_a + b_a.reshape(1, -1)) * bound

    # Check both the output_bound == 1.0 fast path and the scaled path.
    for bound in (1.0, 2.0):
        out = deterministic_continuous_policy_forward(
            x, packed, info, output_bound=bound)
        out = jax.block_until_ready(out)
        ref = ref_forward(x, params, bound)
        assert out.shape == (batch, output_size)
        assert jnp.allclose(out, ref, atol=1e-5, rtol=1e-5), f"mismatch @ bound={bound}"

    print("KERNEL_OK")
</pallas_src>

<mosaic_0001>
module attributes {stable_mosaic.version = 11 : i64} {
  func.func @_fused_mlp_kernel(%arg0: memref<2x16xf32, #tpu.memory_space<vmem>>, %arg1: memref<296x128xf32, #tpu.memory_space<vmem>>, %arg2: memref<2x128xf32, #tpu.memory_space<vmem>>) attributes {dimension_semantics = [], scalar_prefetch = 0 : i64, scratch_operands = 0 : i64, tpu.core_type = #tpu.core_type<tc>} {
    %c0 = arith.constant 0 : index
    %c0_0 = arith.constant 0 : index
    %0 = vector.load %arg0[%c0, %c0_0] : memref<2x16xf32, #tpu.memory_space<vmem>>, vector<2x16xf32>
    %c0_1 = arith.constant 0 : index
    %c0_2 = arith.constant 0 : index
    %1 = vector.load %arg1[%c0_1, %c0_2] : memref<296x128xf32, #tpu.memory_space<vmem>>, vector<16x128xf32>
    %c16 = arith.constant 16 : index
    %c0_3 = arith.constant 0 : index
    %2 = vector.load %arg1[%c16, %c0_3] : memref<296x128xf32, #tpu.memory_space<vmem>>, vector<1x128xf32>
    %cst = arith.constant dense<0.000000e+00> : vector<2x128xf32>
    %3 = tpu.matmul %0, %1, %cst {dimension_numbers = #tpu.dot_dimension_numbers<[1], [0], [0], [1], [0, 0, 1, 1], [], []>} : vector<2x16xf32>, vector<16x128xf32>, vector<2x128xf32> -> vector<2x128xf32>
    %4 = vector.broadcast %2 : vector<1x128xf32> to vector<2x128xf32>
    %5 = arith.addf %3, %4 : vector<2x128xf32>
    %cst_4 = arith.constant 0.000000e+00 : f32
    %6 = vector.broadcast %cst_4 : f32 to vector<2x128xf32>
    %7 = arith.maximumf %5, %6 : vector<2x128xf32>
    %c24 = arith.constant 24 : index
    %c0_5 = arith.constant 0 : index
    %8 = vector.load %arg1[%c24, %c0_5] : memref<296x128xf32, #tpu.memory_space<vmem>>, vector<128x128xf32>
    %c152 = arith.constant 152 : index
    %c0_6 = arith.constant 0 : index
    %9 = vector.load %arg1[%c152, %c0_6] : memref<296x128xf32, #tpu.memory_space<vmem>>, vector<1x128xf32>
    %cst_7 = arith.constant dense<0.000000e+00> : vector<2x128xf32>
    %10 = tpu.matmul %7, %8, %cst_7 {dimension_numbers = #tpu.dot_dimension_numbers<[1], [0], [0], [1], [0, 0, 1, 1], [], []>} : vector<2x128xf32>, vector<128x128xf32>, vector<2x128xf32> -> vector<2x128xf32>
    %11 = vector.broadcast %9 : vector<1x128xf32> to vector<2x128xf32>
    %12 = arith.addf %10, %11 : vector<2x128xf32>
    %cst_8 = arith.constant 0.000000e+00 : f32
    %13 = vector.broadcast %cst_8 : f32 to vector<2x128xf32>
    %14 = arith.maximumf %12, %13 : vector<2x128xf32>
    %c160 = arith.constant 160 : index
    %c0_9 = arith.constant 0 : index
    %15 = vector.load %arg1[%c160, %c0_9] : memref<296x128xf32, #tpu.memory_space<vmem>>, vector<128x128xf32>
    %c288 = arith.constant 288 : index
    %c0_10 = arith.constant 0 : index
    %16 = vector.load %arg1[%c288, %c0_10] : memref<296x128xf32, #tpu.memory_space<vmem>>, vector<1x128xf32>
    %cst_11 = arith.constant dense<0.000000e+00> : vector<2x128xf32>
    %17 = tpu.matmul %14, %15, %cst_11 {dimension_numbers = #tpu.dot_dimension_numbers<[1], [0], [0], [1], [0, 0, 1, 1], [], []>} : vector<2x128xf32>, vector<128x128xf32>, vector<2x128xf32> -> vector<2x128xf32>
    %18 = vector.broadcast %16 : vector<1x128xf32> to vector<2x128xf32>
    %19 = arith.addf %17, %18 : vector<2x128xf32>
    %20 = math.tanh %19 : vector<2x128xf32>
    %c0_12 = arith.constant 0 : index
    %c0_13 = arith.constant 0 : index
    %21 = vector.load %arg2[%c0_12, %c0_13] : memref<2x128xf32, #tpu.memory_space<vmem>>, vector<2x128xf32>
    tpu.vector_store %arg2[%c0_12, %c0_13], %20 {strides = array<i32>} : memref<2x128xf32, #tpu.memory_space<vmem>>, vector<2x128xf32>,
    return
  }
}

</mosaic_0001>

<bundles_post_ra>
// kernel: tpu_custom_call.1
= control target key start
LH: loop header
LB: loop body
LE: loop exit
PB: predicated region body
PF: predicated region fallthrough
CT: control target
= control target key end

     0   :  { %7 = vsyncpa [#allocation3], 0  ;;  %s586_s0 = inlined_call_operand.hbm [shape: f32[2,16], index: 0, kind: input, shape index: {}]   ;;  %s587_s1 = inlined_call_operand.hbm [shape: f32[296,128], index: 1, kind: input, shape index: {}]   ;;  %s588_s2 = inlined_call_operand.hbm [shape: f32[2,128], index: 2, kind: output, shape index: {}]  }
   0x1   :  { %8 = vsyncpa [#allocation6], 0 }
   0x2   :  { %9 = vsyncpa [#allocation4], 0  ;;  %s515_s9 = smov [#allocation2]   ;;  %s516_s11 = smov [#allocation5]  }
   0x3   :  { %s16_s10 = sshll.u32 %s515_s9, 4  ;;  %s25_s12 = sshll.u32 %s516_s11, 4  ;;  %s17_s10 = int_to_ptr.vmem [resolvable:$true] %s16_s10  ;;  %s26_s12 = int_to_ptr.vmem [resolvable:$true] %s25_s12 }
   0x4   :  { %s457_s13 = scalar_lea.vmem %s17_s10, 32  ;;  %p462_p1 = scmp.lt.s32.totalorder %s17_s10, %s17_s10 }
   0x5   :  { %p458_p0 = scmp.ne.s32.totalorder %s17_s10, %s457_s13  ;;  %p463_p2 = scmp.lt.s32.totalorder %s457_s13, %s457_s13 }
   0x7   :  { %p464_p3 = por %p463_p2, %p462_p1 }
   0x9   :  { %p465_p4 = pnand %p464_p3, %p458_p0 }
   0xb   :  { %468 = shalt.err (!%p465_p4)
}
   0xc   :  { %19 = dma.hbm_to_vmem [thread:$0]  %s586_s0, 32, %s17_s10, [#allocation3]  }
   0xd   :  { %s477_s16 = scalar_lea.vmem %s26_s12, 4736  ;;  %p482_p6 = scmp.lt.s32.totalorder %s26_s12, %s26_s12 }
   0xe   :  { %p478_p5 = scmp.ne.s32.totalorder %s26_s12, %s477_s16  ;;  %p483_p7 = scmp.lt.s32.totalorder %s477_s16, %s477_s16 }
  0x10   :  { %p484_p8 = por %p483_p7, %p482_p6 }
  0x12   :  { %p485_p9 = pnand %p484_p8, %p478_p5 }
  0x14   :  { %488 = shalt.err (!%p485_p9)
}
  0x15   :  { %s517_s17 = smov 128   ;;  %s518_s18 = smov 8  }
  0x16   :  { %31 = dma.hbm_to_vmem [thread:$0]  %s587_s1, 4736, %s26_s12, [#allocation6], %s517_s17, %s517_s17, %s518_s18  }
  0x17   :  { %509 = dma.done.wait [#allocation3], 32  }
  0x18   :  { %510 = vsyncadd [#allocation3], 4294967264 }
  0x19   :  { %511 = dma.done.wait [#allocation6], 4736  }
  0x1a   :  { %512 = vsyncadd [#allocation6], 4294962560  ;;  %v519_v0 = vmov 0.0   ;;  %vm520_vm0 = vmmov 0   ;;  %v40_v1 = vld [vmem:[#allocation5 + $0x8] sm:$0xff]  ;;  %v39_v2 = vld [vmem:[#allocation5] sm:$0xff] }
  0x1b   :  { %363 = vmatprep.subr.mxu0 %v519_v0  ;;  %367 = vmatprep.mubr.msk.f32.mxu0 %vm520_vm0, %v519_v0  ;;  %v38_v3 = vld [vmem:[#allocation2] sm:$0x3]  ;;  %vm46_vm1 = vcmask 130048   ;;  %v136_v4 = vld [vmem:[#allocation5 + $0x90] sm:$0xff]  ;;  %v135_v5 = vld [vmem:[#allocation5 + $0x88] sm:$0xff]  ;;  %s521_s0 = smov [#allocation7]  }
  0x1c   :  { %370 = vmatprep.subr.mxu1 %v519_v0  ;;  %402 = vmatprep.mubr.msk.f32.mxu1 %vm520_vm0, %v519_v0  ;;  %v134_v6 = vld [vmem:[#allocation5 + $0x80] sm:$0xff]  ;;  %v133_v7 = vld [vmem:[#allocation5 + $0x78] sm:$0xff]  ;;  %v132_v8 = vld [vmem:[#allocation5 + $0x70] sm:$0xff]  ;;  %s312_s1 = sshll.u32 %s521_s0, 4  ;;  %s313_s1 = int_to_ptr.vmem [resolvable:$true] %s312_s1 }
  0x1d   :  { %364 = vmatpush3.msra.mxu0 %v40_v1  ;;  %371 = vmatpush3.msra.mxu1 %v136_v4  ;;  %v131_v9 = vld [vmem:[#allocation5 + $0x68] sm:$0xff]  ;;  %v130_v10 = vld [vmem:[#allocation5 + $0x60] sm:$0xff]  ;;  %v129_v11 = vld [vmem:[#allocation5 + $0x58] sm:$0xff]  ;;  %s489_s21 = scalar_lea.vmem %s313_s1, 32  ;;  %p494_p11 = scmp.lt.s32.totalorder %s313_s1, %s313_s1 }
  0x1e   :  { %365 = vmatprep.subr.mxu0 %v519_v0  ;;  %372 = vmatprep.subr.mxu1 %v519_v0  ;;  %v128_v12 = vld [vmem:[#allocation5 + $0x50] sm:$0xff]  ;;  %v127_v13 = vld [vmem:[#allocation5 + $0x48] sm:$0xff]  ;;  %v126_v14 = vld [vmem:[#allocation5 + $0x40] sm:$0xff]  ;;  %p490_p10 = scmp.ne.s32.totalorder %s313_s1, %s489_s21  ;;  %p495_p12 = scmp.lt.s32.totalorder %s489_s21, %s489_s21 }
  0x1f   :  { %366 = vmatpush3.msra.mxu0 %v39_v2  ;;  %373 = vmatpush3.msra.mxu1 %v135_v5  ;;  %v125_v15 = vld [vmem:[#allocation5 + $0x38] sm:$0xff]  ;;  %v124_v16 = vld [vmem:[#allocation5 + $0x30] sm:$0xff]  ;;  %v123_v17 = vld [vmem:[#allocation5 + $0x28] sm:$0xff] }
  0x20   :  { %368 = vmatmul.mubr.msk.f32.vlgmr.msra.gmra.mxu0 %vm46_vm1, %v38_v3  ;;  %374 = vmatprep.subr.mxu1 %v519_v0  ;;  %v122_v18 = vld [vmem:[#allocation5 + $0x20] sm:$0xff]  ;;  %v121_v19 = vld [vmem:[#allocation5 + $0x18] sm:$0xff]  ;;  %v227_v21 = vld [vmem:[#allocation5 + $0x110] sm:$0xff]  ;;  %p496_p13 = por %p495_p12, %p494_p11 }
  0x21   :  { %405 = vmatprep.subr.mxu0 %v519_v0  ;;  %375 = vmatpush3.msra.mxu1 %v134_v6  ;;  %v228_v20 = vld [vmem:[#allocation5 + $0x118] sm:$0xff]  ;;  %v226_v22 = vld [vmem:[#allocation5 + $0x108] sm:$0xff]  ;;  %v225_v23 = vld [vmem:[#allocation5 + $0x100] sm:$0xff] }
  0x22   :  { %437 = vmatprep.mubr.msk.f32.mxu0 %vm520_vm0, %v519_v0  ;;  %376 = vmatprep.subr.mxu1 %v519_v0  ;;  %v224_v24 = vld [vmem:[#allocation5 + $0xf8] sm:$0xff]  ;;  %v223_v25 = vld [vmem:[#allocation5 + $0xf0] sm:$0xff]  ;;  %v222_v26 = vld [vmem:[#allocation5 + $0xe8] sm:$0xff]  ;;  %p497_p0 = pnand %p496_p13, %p490_p10 }
  0x23   :  { %377 = vmatpush3.msra.mxu1 %v133_v7  ;;  %406 = vmatpush3.msra.mxu0 %v228_v20  ;;  %v221_v27 = vld [vmem:[#allocation5 + $0xe0] sm:$0xff]  ;;  %v220_v28 = vld [vmem:[#allocation5 + $0xd8] sm:$0xff]  ;;  %v219_v29 = vld [vmem:[#allocation5 + $0xd0] sm:$0xff] }
  0x24   :  { %378 = vmatprep.subr.mxu1 %v519_v0  ;;  %407 = vmatprep.subr.mxu0 %v519_v0  ;;  %v218_v30 = vld [vmem:[#allocation5 + $0xc8] sm:$0xff]  ;;  %v217_v31 = vld [vmem:[#allocation5 + $0xc0] sm:$0xff]  ;;  %v216_v32 = vld [vmem:[#allocation5 + $0xb8] sm:$0xff] }
  0x25   :  { %379 = vmatpush3.msra.mxu1 %v132_v8  ;;  %408 = vmatpush3.msra.mxu0 %v227_v21  ;;  %v322_v33 = vld [vmem:[#allocation5 + $0x10] ss:$0 sm:$0xff]  ;;  %v214_v39 = vld [vmem:[#allocation5 + $0xa8] sm:$0xff]  ;;  %v213_v40 = vld [vmem:[#allocation5 + $0xa0] sm:$0xff] }
  0x26   :  { %380 = vmatprep.subr.mxu1 %v519_v0  ;;  %409 = vmatprep.subr.mxu0 %v519_v0  ;;  %v215_v38 = vld [vmem:[#allocation5 + $0xb0] sm:$0xff]  ;;  %v324_v41 = vld [vmem:[#allocation5 + $0x98] ss:$0 sm:$0xff]  ;;  %v325_v46 = vld [vmem:[#allocation5 + $0x120] ss:$0 sm:$0xff] }
  0x27   :  { %381 = vmatpush3.msra.mxu1 %v131_v9  ;;  %410 = vmatpush3.msra.mxu0 %v226_v22 }
  0x28   :  { %382 = vmatprep.subr.mxu1 %v519_v0  ;;  %411 = vmatprep.subr.mxu0 %v519_v0 }
  0x29   :  { %383 = vmatpush3.msra.mxu1 %v130_v10  ;;  %412 = vmatpush3.msra.mxu0 %v225_v23 }
  0x2a   :  { %384 = vmatprep.subr.mxu1 %v519_v0  ;;  %413 = vmatprep.subr.mxu0 %v519_v0 }
  0x2b   :  { %385 = vmatpush3.msra.mxu1 %v129_v11  ;;  %414 = vmatpush3.msra.mxu0 %v224_v24 }
  0x2c   :  { %386 = vmatprep.subr.mxu1 %v519_v0  ;;  %415 = vmatprep.subr.mxu0 %v519_v0 }
  0x2d   :  { %387 = vmatpush3.msra.mxu1 %v128_v12  ;;  %416 = vmatpush3.msra.mxu0 %v223_v25 }
  0x2e   :  { %388 = vmatprep.subr.mxu1 %v519_v0  ;;  %417 = vmatprep.subr.mxu0 %v519_v0 }
  0x2f   :  { %389 = vmatpush3.msra.mxu1 %v127_v13  ;;  %418 = vmatpush3.msra.mxu0 %v222_v26 }
  0x30   :  { %390 = vmatprep.subr.mxu1 %v519_v0  ;;  %419 = vmatprep.subr.mxu0 %v519_v0 }
  0x31   :  { %391 = vmatpush3.msra.mxu1 %v126_v14  ;;  %420 = vmatpush3.msra.mxu0 %v221_v27 }
  0x32   :  { %392 = vmatprep.subr.mxu1 %v519_v0  ;;  %421 = vmatprep.subr.mxu0 %v519_v0 }
  0x33   :  { %393 = vmatpush3.msra.mxu1 %v125_v15  ;;  %422 = vmatpush3.msra.mxu0 %v220_v28 }
  0x34   :  { %394 = vmatprep.subr.mxu1 %v519_v0  ;;  %423 = vmatprep.subr.mxu0 %v519_v0 }
  0x35   :  { %395 = vmatpush3.msra.mxu1 %v124_v16  ;;  %424 = vmatpush3.msra.mxu0 %v219_v29 }
  0x36   :  { %396 = vmatprep.subr.mxu1 %v519_v0  ;;  %425 = vmatprep.subr.mxu0 %v519_v0 }
  0x37   :  { %397 = vmatpush3.msra.mxu1 %v123_v17  ;;  %426 = vmatpush3.msra.mxu0 %v218_v30 }
  0x38   :  { %398 = vmatprep.subr.mxu1 %v519_v0  ;;  %427 = vmatprep.subr.mxu0 %v519_v0 }
  0x39   :  { %399 = vmatpush3.msra.mxu1 %v122_v18  ;;  %428 = vmatpush3.msra.mxu0 %v217_v31 }
  0x3a   :  { %400 = vmatprep.subr.mxu1 %v519_v0  ;;  %429 = vmatprep.subr.mxu0 %v519_v0 }
  0x3b   :  { %401 = vmatpush3.msra.mxu1 %v121_v19  ;;  %430 = vmatpush3.msra.mxu0 %v216_v32 }
  0x3c   :  { %431 = vmatprep.subr.mxu0 %v519_v0 }
  0x3d   :  { %432 = vmatpush3.msra.mxu0 %v215_v38 }
  0x3e   :  { %433 = vmatprep.subr.mxu0 %v519_v0 }
  0x3f   :  { %434 = vmatpush3.msra.mxu0 %v214_v39 }
  0x40   :  { %435 = vmatprep.subr.mxu0 %v519_v0 }
  0x41   :  { %436 = vmatpush3.msra.mxu0 %v213_v40 }
  0xe0   :  { %v116_v34 = vpop.f32.mrf.mxu0 }
  0xe1   :  { %v117_v35 = vadd.f32 %v322_v33, %v116_v34 }
  0xe2   :  { %v369_v36 = vpop.f32.mrf.mxu0 }
  0xe3   :  { %v120_v37 = vmax.f32 %v117_v35, 0.0 }
  0xe5   :  { %403 = vmatmul.mubr.f32.vlgmr.msra.gmra.mxu1 %v120_v37 }
 0x1a5   :  { %v208_v42 = vpop.f32.mrf.mxu1 }
 0x1a6   :  { %v209_v43 = vadd.f32 %v324_v41, %v208_v42 }
 0x1a7   :  { %v404_v44 = vpop.f32.mrf.mxu1 }
 0x1a8   :  { %v212_v45 = vmax.f32 %v209_v43, 0.0 }
 0x1aa   :  { %438 = vmatmul.mubr.f32.vlgmr.msra.gmra.mxu0 %v212_v45 }
 0x26a   :  { %v300_v47 = vpop.f32.mrf.mxu0 }
 0x26b   :  { %v301_v48 = vadd.f32 %v325_v46, %v300_v47 }
 0x26c   :  { %v439_v49 = vpop.f32.mrf.mxu0 }
 0x26d   :  { %447 = vtanh.f32 %v301_v48 }
 0x27a   :  { %v448_v50 = vpop.eup %447 }
 0x27b   :  { %305 = vst [vmem:[#allocation7] sm:$0x3] %v448_v50 }
 0x27c   :  { %500 = shalt.err (!%p497_p0)
}
 0x27d   :  { %315 = dma.vmem_to_hbm [thread:$0]  %s313_s1, 32, %s588_s2, [#allocation4]  }
 0x27e   :  { %513 = dma.done.wait [#allocation4], 32  }
 0x27f   :  { %514 = vsyncadd [#allocation4], 4294967264 }
 0x280   :  { %319 = vsyncpa [#allocation3], 1 }
 0x281   :  { %320 = vsyncpa [#allocation6], 1 }
 0x282   :  { %321 = vsyncpa [#allocation4], 1 }

</bundles_post_ra>
